<compile_context>
chip_gen: v5e
topology: v5e:2x2
jax: 0.10.0
libtpu: 0.0.40
codegen_flags: <defaults>
</compile_context>

<pallas_src>
import jax
import jax.numpy as jnp
from jax.experimental import pallas as pl
from jax.experimental.pallas import tpu as pltpu

LANE = 128
SUBLANE = 8
NEG_SLOPE = 0.01  # torch.nn.LeakyReLU default negative_slope


def _cdiv(a, b):
    return (a + b - 1) // b


def _round_up(x, m):
    return _cdiv(x, m) * m


def _tpu_generation():
    """Best-effort TPU generation (5 / 6 / 7); 0 if unknown."""
    try:
        kind = jax.devices()[0].device_kind.lower()
    except Exception:
        return 0
    for g in (7, 6, 5):
        if f"v{g}" in kind:
            return g
    return 0


def _leaky_relu(v):
    return jnp.where(v > 0, v, v * jnp.asarray(NEG_SLOPE, v.dtype))


def _pad_hidden(d, gen):
    # v6e/v7x MXU is 2x256x256: hidden in (128, ...] rounds to 256 multiples for full occupancy.
    if d > LANE and gen in (6, 7):
        return _round_up(d, 2 * LANE)
    return _round_up(d, LANE)


def prepare_params(params):
    """One-time (init-time) prep: pad hidden dims to MXU-friendly widths, cast weights to bf16.
    Weights are (in, out) = torch.nn.Linear.weight.T.  Call once, NOT per forward."""
    gen = _tpu_generation()
    n = len(params)
    prepared = []
    for i, (w, b) in enumerate(params):
        k_in, k_out = w.shape
        in_dim = k_in if i == 0 else _pad_hidden(k_in, gen)
        out_dim = k_out if i == n - 1 else _pad_hidden(k_out, gen)   # last layer: unpadded N
        w_p = jnp.zeros((in_dim, out_dim), jnp.bfloat16).at[:k_in, :k_out].set(
            w.astype(jnp.bfloat16))
        b_p = jnp.zeros((1, out_dim), jnp.float32).at[:, :k_out].set(
            jnp.reshape(b, (1, -1)).astype(jnp.float32))
        prepared.append((w_p, b_p))
    return prepared


def _make_policy_kernel(n_linear, vpu_bf16):
    """Fused MLP for one batch tile: n_linear matmuls + bias + LeakyReLU (except last)."""
    def kernel(x_ref, *refs):
        o_ref = refs[-1]
        h = x_ref[...].astype(jnp.bfloat16)          # in-kernel cast: x stays f32 in HBM
        for i in range(n_linear):
            w = refs[2 * i][...]                     # bf16 (MXU input)
            b = refs[2 * i + 1][...]                 # f32 (1, out)
            acc = jnp.dot(h, w, preferred_element_type=jnp.float32) + b   # f32 accum + bias
            if i < n_linear - 1:
                if vpu_bf16:                         # v6e/v7x: bf16 VPU -> half the vreg traffic
                    h = _leaky_relu(acc.astype(jnp.bfloat16))
                else:                                # v5e: no bf16 VPU -> elementwise in f32
                    h = _leaky_relu(acc).astype(jnp.bfloat16)
            else:
                o_ref[...] = acc.astype(o_ref.dtype)  # unpadded (tb, action) block
    return kernel


def _choose_batch_tile(B, obs, h_pad, action, x_itemsize, gen, resident_bytes, batch_tile):
    if batch_tile is None:
        # v5e/v6e: 128 MiB VMEM -> big tiles amortize ~0.35us/step; v7x: 64 MiB per TC.
        batch_tile = 2048 if gen == 7 else 4096
    tb = min(batch_tile, _round_up(max(B, 1), SUBLANE))
    tb = max(_round_up(tb, SUBLANE), SUBLANE)
    # Cap tb by a VMEM budget (streamed tiles + f32 intermediates + resident weights + headroom).
    budget = (48 if gen == 7 else 96) * 1024 * 1024 - resident_bytes - (4 << 20)
    per_row = 2 * obs * x_itemsize + 2 * action * 4 + 6 * h_pad * 4
    tb_max = max((budget // max(per_row, 1)) // SUBLANE * SUBLANE, SUBLANE)
    tb = min(tb, tb_max)
    # v7x: batch axis is "parallel" across 2 TensorCores -> make sure both get a tile.
    if gen == 7 and _cdiv(B, tb) < 2 and B > SUBLANE:
        tb = max(_round_up(_cdiv(B, 2), SUBLANE), SUBLANE)
    return tb


def policy_forward(x, prepared_params, *, batch_tile=None):
    """x: (B, obs) f32/bf16 (kept in original dtype; cast to bf16 inside the kernel).
    prepared_params: output of prepare_params()."""
    B, obs = x.shape
    n_linear = len(prepared_params)
    assert prepared_params[0][0].shape[0] == obs
    h_pad = prepared_params[0][0].shape[1]
    action = prepared_params[-1][0].shape[1]
    gen = _tpu_generation()
    vpu_bf16 = gen in (6, 7)

    resident_bytes = sum(w.size * w.dtype.itemsize + b.size * b.dtype.itemsize
                         for w, b in prepared_params)
    tb = _choose_batch_tile(B, obs, h_pad, action, x.dtype.itemsize, gen,
                            resident_bytes, batch_tile)
    num_tiles = _cdiv(B, tb)          # no jnp.pad of x: ragged edge tile is masked by Pallas

    kernel = _make_policy_kernel(n_linear, vpu_bf16)

    stream_bytes = 2 * tb * obs * x.dtype.itemsize + 2 * tb * action * 4
    scratch_bytes = 6 * tb * h_pad * 4
    vmem_limit = int(min(max(2 * resident_bytes + stream_bytes + scratch_bytes + (4 << 20),
                             16 << 20),
                         (48 if gen == 7 else 100) << 20))

    flops = 2 * B * (obs * h_pad + max(n_linear - 2, 0) * h_pad * h_pad + h_pad * action)
    bytes_accessed = x.size * x.dtype.itemsize + resident_bytes + B * action * 4
    cost = pl.CostEstimate(flops=flops, transcendentals=0, bytes_accessed=bytes_accessed)

    flat = [x]
    for w_p, b_p in prepared_params:
        flat.append(w_p)
        flat.append(b_p)

    def call(resident):
        in_specs = [pl.BlockSpec((tb, obs), lambda bi: (bi, 0))]       # streamed per batch tile
        for w_p, b_p in prepared_params:
            if resident:
                # whole array pinned in VMEM once: single-buffered, no per-tile re-DMA
                in_specs.append(pl.BlockSpec(memory_space=pltpu.MemorySpace.VMEM))
                in_specs.append(pl.BlockSpec(memory_space=pltpu.MemorySpace.VMEM))
            else:
                in_specs.append(pl.BlockSpec(w_p.shape, lambda bi: (0, 0)))
                in_specs.append(pl.BlockSpec(b_p.shape, lambda bi: (0, 0)))
        return pl.pallas_call(
            kernel,
            out_shape=jax.ShapeDtypeStruct((B, action), jnp.float32),  # unpadded logits
            grid_spec=pltpu.PrefetchScalarGridSpec(
                num_scalar_prefetch=0,
                grid=(num_tiles,),
                in_specs=in_specs,
                out_specs=pl.BlockSpec((tb, action), lambda bi: (bi, 0)),
            ),
            compiler_params=pltpu.CompilerParams(
                dimension_semantics=("parallel",),     # shard batch tiles across v7x's 2 TCs
                vmem_limit_bytes=vmem_limit,
            ),
            cost_estimate=cost,
        )(*flat)

    try:
        return call(resident=True)
    except Exception:
        # Fallback: constant-index double-buffered BlockSpecs (previously validated path).
        return call(resident=False)


def init_params(key, obs_size, hidden, action_size, num_layers=2):
    """Deterministic synthetic init mirroring layer_init shapes.
    Weights stored as (in, out) = transpose of torch.nn.Linear.weight."""
    dims = [(obs_size, hidden)] + [(hidden, hidden)] * num_layers + [(hidden, action_size)]
    stds = [2.0 ** 0.5] * (num_layers + 1) + [0.01]   # last layer: layer_init(std=0.01)
    params = []
    for (fan_in, fan_out), std in zip(dims, stds):
        key, kw, kb = jax.random.split(key, 3)
        w = jax.random.normal(kw, (fan_in, fan_out), jnp.float32) * (std / jnp.sqrt(jnp.float32(fan_in)))
        b = jax.random.normal(kb, (fan_out,), jnp.float32) * 0.01
        params.append((w, b))
    return params


def policy_ref_f32(x, params):
    """Pure-f32 JAX reference of the torch forward."""
    h = x
    n = len(params)
    for i, (w, b) in enumerate(params):
        h = h @ w + b
        if i < n - 1:
            h = _leaky_relu(h)
    return h


def policy_ref_mirror(x, params, vpu_bf16):
    """Reference mirroring kernel numerics: bf16 matmul inputs, f32 accum, matching VPU dtype."""
    h = x.astype(jnp.bfloat16)
    n = len(params)
    for i, (w, b) in enumerate(params):
        acc = jnp.dot(h, w.astype(jnp.bfloat16),
                      preferred_element_type=jnp.float32) + b.astype(jnp.float32)
        if i < n - 1:
            if vpu_bf16:
                h = _leaky_relu(acc.astype(jnp.bfloat16))
            else:
                h = _leaky_relu(acc).astype(jnp.bfloat16)
        else:
            return acc


if __name__ == "__main__":
    key = jax.random.PRNGKey(0)
    batch, obs_size, hidden, action_size, num_layers = 8, 16, 32, 4, 2

    kx, kp = jax.random.split(key)
    x = jax.random.normal(kx, (batch, obs_size), dtype=jnp.float32)
    params = init_params(kp, obs_size, hidden, action_size, num_layers=num_layers)

    prepared = prepare_params(params)          # one-time prep, out of the hot path

    out = policy_forward(x, prepared)
    out = jax.block_until_ready(out)

    assert out.shape == (batch, action_size), out.shape
    vpu_bf16 = _tpu_generation() in (6, 7)
    ref_mirror = policy_ref_mirror(x, params, vpu_bf16)
    ref_f32 = policy_ref_f32(x, params)
    assert jnp.allclose(out, ref_mirror, atol=1e-3, rtol=1e-3), float(jnp.max(jnp.abs(out - ref_mirror)))
    assert jnp.allclose(out, ref_f32, atol=3e-2, rtol=3e-2), float(jnp.max(jnp.abs(out - ref_f32)))

    print("KERNEL_OK")
</pallas_src>

<mosaic_0001>
module attributes {stable_mosaic.version = 11 : i64} {
  func.func @kernel(%arg0: i32, %arg1: memref<8x16xf32, #tpu.memory_space<vmem>>, %arg2: memref<16x128xbf16, #tpu.memory_space<vmem>>, %arg3: memref<1x128xf32, #tpu.memory_space<vmem>>, %arg4: memref<128x128xbf16, #tpu.memory_space<vmem>>, %arg5: memref<1x128xf32, #tpu.memory_space<vmem>>, %arg6: memref<128x128xbf16, #tpu.memory_space<vmem>>, %arg7: memref<1x128xf32, #tpu.memory_space<vmem>>, %arg8: memref<128x4xbf16, #tpu.memory_space<vmem>>, %arg9: memref<1x4xf32, #tpu.memory_space<vmem>>, %arg10: memref<8x4xf32, #tpu.memory_space<vmem>>) attributes {dimension_semantics = [#tpu.dimension_semantics<parallel>], iteration_bounds = array<i64: 1>, scalar_prefetch = 0 : i64, scratch_operands = 0 : i64, tpu.core_type = #tpu.core_type<tc>, window_params = [{transform_indices = @transform_0, window_bounds = array<i64: 8, 16>}, {pipeline_mode = #tpu.pipeline_mode<synchronous>, transform_indices = @transform_1, window_bounds = array<i64: 16, 128>}, {pipeline_mode = #tpu.pipeline_mode<synchronous>, transform_indices = @transform_2, window_bounds = array<i64: 1, 128>}, {pipeline_mode = #tpu.pipeline_mode<synchronous>, transform_indices = @transform_3, window_bounds = array<i64: 128, 128>}, {pipeline_mode = #tpu.pipeline_mode<synchronous>, transform_indices = @transform_4, window_bounds = array<i64: 1, 128>}, {pipeline_mode = #tpu.pipeline_mode<synchronous>, transform_indices = @transform_5, window_bounds = array<i64: 128, 128>}, {pipeline_mode = #tpu.pipeline_mode<synchronous>, transform_indices = @transform_6, window_bounds = array<i64: 1, 128>}, {pipeline_mode = #tpu.pipeline_mode<synchronous>, transform_indices = @transform_7, window_bounds = array<i64: 128, 4>}, {pipeline_mode = #tpu.pipeline_mode<synchronous>, transform_indices = @transform_8, window_bounds = array<i64: 1, 4>}, {transform_indices = @transform_9, window_bounds = array<i64: 8, 4>}]} {
    %c0 = arith.constant 0 : index
    %c0_0 = arith.constant 0 : index
    %0 = vector.load %arg1[%c0, %c0_0] : memref<8x16xf32, #tpu.memory_space<vmem>>, vector<8x16xf32>
    %1 = arith.truncf %0 : vector<8x16xf32> to vector<8x16xbf16>
    %c0_1 = arith.constant 0 : index
    %c0_2 = arith.constant 0 : index
    %2 = vector.load %arg2[%c0_1, %c0_2] : memref<16x128xbf16, #tpu.memory_space<vmem>>, vector<16x128xbf16>
    %c0_3 = arith.constant 0 : index
    %c0_4 = arith.constant 0 : index
    %3 = vector.load %arg3[%c0_3, %c0_4] : memref<1x128xf32, #tpu.memory_space<vmem>>, vector<1x128xf32>
    %cst = arith.constant dense<0.000000e+00> : vector<8x128xf32>
    %4 = tpu.matmul %1, %2, %cst {dimension_numbers = #tpu.dot_dimension_numbers<[1], [0], [0], [1], [0, 0, 1, 1], [], []>} : vector<8x16xbf16>, vector<16x128xbf16>, vector<8x128xf32> -> vector<8x128xf32>
    %5 = vector.broadcast %3 : vector<1x128xf32> to vector<8x128xf32>
    %6 = arith.addf %4, %5 : vector<8x128xf32>
    %cst_5 = arith.constant 0.000000e+00 : f32
    %7 = vector.broadcast %cst_5 : f32 to vector<8x128xf32>
    %8 = arith.cmpf ogt, %6, %7 : vector<8x128xf32>
    %cst_6 = arith.constant 0.00999999977 : f32
    %9 = vector.broadcast %cst_6 : f32 to vector<8x128xf32>
    %10 = arith.mulf %6, %9 : vector<8x128xf32>
    %11 = arith.select %8, %6, %10 : vector<8x128xi1>, vector<8x128xf32>
    %12 = arith.truncf %11 : vector<8x128xf32> to vector<8x128xbf16>
    %c0_7 = arith.constant 0 : index
    %c0_8 = arith.constant 0 : index
    %13 = vector.load %arg4[%c0_7, %c0_8] : memref<128x128xbf16, #tpu.memory_space<vmem>>, vector<128x128xbf16>
    %c0_9 = arith.constant 0 : index
    %c0_10 = arith.constant 0 : index
    %14 = vector.load %arg5[%c0_9, %c0_10] : memref<1x128xf32, #tpu.memory_space<vmem>>, vector<1x128xf32>
    %cst_11 = arith.constant dense<0.000000e+00> : vector<8x128xf32>
    %15 = tpu.matmul %12, %13, %cst_11 {dimension_numbers = #tpu.dot_dimension_numbers<[1], [0], [0], [1], [0, 0, 1, 1], [], []>} : vector<8x128xbf16>, vector<128x128xbf16>, vector<8x128xf32> -> vector<8x128xf32>
    %16 = vector.broadcast %14 : vector<1x128xf32> to vector<8x128xf32>
    %17 = arith.addf %15, %16 : vector<8x128xf32>
    %cst_12 = arith.constant 0.000000e+00 : f32
    %18 = vector.broadcast %cst_12 : f32 to vector<8x128xf32>
    %19 = arith.cmpf ogt, %17, %18 : vector<8x128xf32>
    %cst_13 = arith.constant 0.00999999977 : f32
    %20 = vector.broadcast %cst_13 : f32 to vector<8x128xf32>
    %21 = arith.mulf %17, %20 : vector<8x128xf32>
    %22 = arith.select %19, %17, %21 : vector<8x128xi1>, vector<8x128xf32>
    %23 = arith.truncf %22 : vector<8x128xf32> to vector<8x128xbf16>
    %c0_14 = arith.constant 0 : index
    %c0_15 = arith.constant 0 : index
    %24 = vector.load %arg6[%c0_14, %c0_15] : memref<128x128xbf16, #tpu.memory_space<vmem>>, vector<128x128xbf16>
    %c0_16 = arith.constant 0 : index
    %c0_17 = arith.constant 0 : index
    %25 = vector.load %arg7[%c0_16, %c0_17] : memref<1x128xf32, #tpu.memory_space<vmem>>, vector<1x128xf32>
    %cst_18 = arith.constant dense<0.000000e+00> : vector<8x128xf32>
    %26 = tpu.matmul %23, %24, %cst_18 {dimension_numbers = #tpu.dot_dimension_numbers<[1], [0], [0], [1], [0, 0, 1, 1], [], []>} : vector<8x128xbf16>, vector<128x128xbf16>, vector<8x128xf32> -> vector<8x128xf32>
    %27 = vector.broadcast %25 : vector<1x128xf32> to vector<8x128xf32>
    %28 = arith.addf %26, %27 : vector<8x128xf32>
    %cst_19 = arith.constant 0.000000e+00 : f32
    %29 = vector.broadcast %cst_19 : f32 to vector<8x128xf32>
    %30 = arith.cmpf ogt, %28, %29 : vector<8x128xf32>
    %cst_20 = arith.constant 0.00999999977 : f32
    %31 = vector.broadcast %cst_20 : f32 to vector<8x128xf32>
    %32 = arith.mulf %28, %31 : vector<8x128xf32>
    %33 = arith.select %30, %28, %32 : vector<8x128xi1>, vector<8x128xf32>
    %34 = arith.truncf %33 : vector<8x128xf32> to vector<8x128xbf16>
    %c0_21 = arith.constant 0 : index
    %c0_22 = arith.constant 0 : index
    %35 = vector.load %arg8[%c0_21, %c0_22] : memref<128x4xbf16, #tpu.memory_space<vmem>>, vector<128x4xbf16>
    %c0_23 = arith.constant 0 : index
    %c0_24 = arith.constant 0 : index
    %36 = vector.load %arg9[%c0_23, %c0_24] : memref<1x4xf32, #tpu.memory_space<vmem>>, vector<1x4xf32>
    %cst_25 = arith.constant dense<0.000000e+00> : vector<8x4xf32>
    %37 = tpu.matmul %34, %35, %cst_25 {dimension_numbers = #tpu.dot_dimension_numbers<[1], [0], [0], [1], [0, 0, 1, 1], [], []>} : vector<8x128xbf16>, vector<128x4xbf16>, vector<8x4xf32> -> vector<8x4xf32>
    %38 = vector.broadcast %36 : vector<1x4xf32> to vector<8x4xf32>
    %39 = arith.addf %37, %38 : vector<8x4xf32>
    %c0_26 = arith.constant 0 : index
    %c0_27 = arith.constant 0 : index
    %40 = vector.load %arg10[%c0_26, %c0_27] : memref<8x4xf32, #tpu.memory_space<vmem>>, vector<8x4xf32>
    tpu.vector_store %arg10[%c0_26, %c0_27], %39 {strides = array<i32>} : memref<8x4xf32, #tpu.memory_space<vmem>>, vector<8x4xf32>,
    return
  }
  func.func @transform_0(%arg0: i32) -> (i32, i32) {
    %c0_i32 = arith.constant 0 : i32
    %c0_i32_0 = arith.constant 0 : i32
    return %arg0, %c0_i32 : i32, i32
  }
  func.func @transform_1(%arg0: i32) -> (i32, i32) {
    %c0_i32 = arith.constant 0 : i32
    %c0_i32_0 = arith.constant 0 : i32
    %c0_i32_1 = arith.constant 0 : i32
    return %c0_i32, %c0_i32_0 : i32, i32
  }
  func.func @transform_2(%arg0: i32) -> (i32, i32) {
    %c0_i32 = arith.constant 0 : i32
    %c0_i32_0 = arith.constant 0 : i32
    %c0_i32_1 = arith.constant 0 : i32
    return %c0_i32, %c0_i32_0 : i32, i32
  }
  func.func @transform_3(%arg0: i32) -> (i32, i32) {
    %c0_i32 = arith.constant 0 : i32
    %c0_i32_0 = arith.constant 0 : i32
    %c0_i32_1 = arith.constant 0 : i32
    return %c0_i32, %c0_i32_0 : i32, i32
  }
  func.func @transform_4(%arg0: i32) -> (i32, i32) {
    %c0_i32 = arith.constant 0 : i32
    %c0_i32_0 = arith.constant 0 : i32
    %c0_i32_1 = arith.constant 0 : i32
    return %c0_i32, %c0_i32_0 : i32, i32
  }
  func.func @transform_5(%arg0: i32) -> (i32, i32) {
    %c0_i32 = arith.constant 0 : i32
    %c0_i32_0 = arith.constant 0 : i32
    %c0_i32_1 = arith.constant 0 : i32
    return %c0_i32, %c0_i32_0 : i32, i32
  }
  func.func @transform_6(%arg0: i32) -> (i32, i32) {
    %c0_i32 = arith.constant 0 : i32
    %c0_i32_0 = arith.constant 0 : i32
    %c0_i32_1 = arith.constant 0 : i32
    return %c0_i32, %c0_i32_0 : i32, i32
  }
  func.func @transform_7(%arg0: i32) -> (i32, i32) {
    %c0_i32 = arith.constant 0 : i32
    %c0_i32_0 = arith.constant 0 : i32
    %c0_i32_1 = arith.constant 0 : i32
    return %c0_i32, %c0_i32_0 : i32, i32
  }
  func.func @transform_8(%arg0: i32) -> (i32, i32) {
    %c0_i32 = arith.constant 0 : i32
    %c0_i32_0 = arith.constant 0 : i32
    %c0_i32_1 = arith.constant 0 : i32
    return %c0_i32, %c0_i32_0 : i32, i32
  }
  func.func @transform_9(%arg0: i32) -> (i32, i32) {
    %c0_i32 = arith.constant 0 : i32
    %c0_i32_0 = arith.constant 0 : i32
    return %arg0, %c0_i32 : i32, i32
  }
}

module attributes {stable_mosaic.version = 11 : i64} {
  func.func @kernel(%arg0: i32, %arg1: memref<8x16xf32, #tpu.memory_space<vmem>>, %arg2: memref<16x128xbf16, #tpu.memory_space<vmem>>, %arg3: memref<1x128xf32, #tpu.memory_space<vmem>>, %arg4: memref<128x128xbf16, #tpu.memory_space<vmem>>, %arg5: memref<1x128xf32, #tpu.memory_space<vmem>>, %arg6: memref<128x128xbf16, #tpu.memory_space<vmem>>, %arg7: memref<1x128xf32, #tpu.memory_space<vmem>>, %arg8: memref<128x4xbf16, #tpu.memory_space<vmem>>, %arg9: memref<1x4xf32, #tpu.memory_space<vmem>>, %arg10: memref<8x4xf32, #tpu.memory_space<vmem>>) attributes {dimension_semantics = [#tpu.dimension_semantics<parallel>], iteration_bounds = array<i64: 1>, scalar_prefetch = 0 : i64, scratch_operands = 0 : i64, tpu.core_type = #tpu.core_type<tc>, window_params = [{transform_indices = @transform_0, window_bounds = array<i64: 8, 16>}, {pipeline_mode = #tpu.pipeline_mode<synchronous>, transform_indices = @transform_1, window_bounds = array<i64: 16, 128>}, {pipeline_mode = #tpu.pipeline_mode<synchronous>, transform_indices = @transform_2, window_bounds = array<i64: 1, 128>}, {pipeline_mode = #tpu.pipeline_mode<synchronous>, transform_indices = @transform_3, window_bounds = array<i64: 128, 128>}, {pipeline_mode = #tpu.pipeline_mode<synchronous>, transform_indices = @transform_4, window_bounds = array<i64: 1, 128>}, {pipeline_mode = #tpu.pipeline_mode<synchronous>, transform_indices = @transform_5, window_bounds = array<i64: 128, 128>}, {pipeline_mode = #tpu.pipeline_mode<synchronous>, transform_indices = @transform_6, window_bounds = array<i64: 1, 128>}, {pipeline_mode = #tpu.pipeline_mode<synchronous>, transform_indices = @transform_7, window_bounds = array<i64: 128, 4>}, {pipeline_mode = #tpu.pipeline_mode<synchronous>, transform_indices = @transform_8, window_bounds = array<i64: 1, 4>}, {transform_indices = @transform_9, window_bounds = array<i64: 8, 4>}]} {
    %c0 = arith.constant 0 : index
    %c0_0 = arith.constant 0 : index
    %0 = vector.load %arg1[%c0, %c0_0] : memref<8x16xf32, #tpu.memory_space<vmem>>, vector<8x16xf32>
    %1 = arith.truncf %0 : vector<8x16xf32> to vector<8x16xbf16>
    %c0_1 = arith.constant 0 : index
    %c0_2 = arith.constant 0 : index
    %2 = vector.load %arg2[%c0_1, %c0_2] : memref<16x128xbf16, #tpu.memory_space<vmem>>, vector<16x128xbf16>
    %c0_3 = arith.constant 0 : index
    %c0_4 = arith.constant 0 : index
    %3 = vector.load %arg3[%c0_3, %c0_4] : memref<1x128xf32, #tpu.memory_space<vmem>>, vector<1x128xf32>
    %cst = arith.constant dense<0.000000e+00> : vector<8x128xf32>
    %4 = tpu.matmul %1, %2, %cst {dimension_numbers = #tpu.dot_dimension_numbers<[1], [0], [0], [1], [0, 0, 1, 1], [], []>} : vector<8x16xbf16>, vector<16x128xbf16>, vector<8x128xf32> -> vector<8x128xf32>
    %5 = vector.broadcast %3 : vector<1x128xf32> to vector<8x128xf32>
    %6 = arith.addf %4, %5 : vector<8x128xf32>
    %cst_5 = arith.constant 0.000000e+00 : f32
    %7 = vector.broadcast %cst_5 : f32 to vector<8x128xf32>
    %8 = arith.cmpf ogt, %6, %7 : vector<8x128xf32>
    %cst_6 = arith.constant 0.00999999977 : f32
    %9 = vector.broadcast %cst_6 : f32 to vector<8x128xf32>
    %10 = arith.mulf %6, %9 : vector<8x128xf32>
    %11 = arith.select %8, %6, %10 : vector<8x128xi1>, vector<8x128xf32>
    %12 = arith.truncf %11 : vector<8x128xf32> to vector<8x128xbf16>
    %c0_7 = arith.constant 0 : index
    %c0_8 = arith.constant 0 : index
    %13 = vector.load %arg4[%c0_7, %c0_8] : memref<128x128xbf16, #tpu.memory_space<vmem>>, vector<128x128xbf16>
    %c0_9 = arith.constant 0 : index
    %c0_10 = arith.constant 0 : index
    %14 = vector.load %arg5[%c0_9, %c0_10] : memref<1x128xf32, #tpu.memory_space<vmem>>, vector<1x128xf32>
    %cst_11 = arith.constant dense<0.000000e+00> : vector<8x128xf32>
    %15 = tpu.matmul %12, %13, %cst_11 {dimension_numbers = #tpu.dot_dimension_numbers<[1], [0], [0], [1], [0, 0, 1, 1], [], []>} : vector<8x128xbf16>, vector<128x128xbf16>, vector<8x128xf32> -> vector<8x128xf32>
    %16 = vector.broadcast %14 : vector<1x128xf32> to vector<8x128xf32>
    %17 = arith.addf %15, %16 : vector<8x128xf32>
    %cst_12 = arith.constant 0.000000e+00 : f32
    %18 = vector.broadcast %cst_12 : f32 to vector<8x128xf32>
    %19 = arith.cmpf ogt, %17, %18 : vector<8x128xf32>
    %cst_13 = arith.constant 0.00999999977 : f32
    %20 = vector.broadcast %cst_13 : f32 to vector<8x128xf32>
    %21 = arith.mulf %17, %20 : vector<8x128xf32>
    %22 = arith.select %19, %17, %21 : vector<8x128xi1>, vector<8x128xf32>
    %23 = arith.truncf %22 : vector<8x128xf32> to vector<8x128xbf16>
    %c0_14 = arith.constant 0 : index
    %c0_15 = arith.constant 0 : index
    %24 = vector.load %arg6[%c0_14, %c0_15] : memref<128x128xbf16, #tpu.memory_space<vmem>>, vector<128x128xbf16>
    %c0_16 = arith.constant 0 : index
    %c0_17 = arith.constant 0 : index
    %25 = vector.load %arg7[%c0_16, %c0_17] : memref<1x128xf32, #tpu.memory_space<vmem>>, vector<1x128xf32>
    %cst_18 = arith.constant dense<0.000000e+00> : vector<8x128xf32>
    %26 = tpu.matmul %23, %24, %cst_18 {dimension_numbers = #tpu.dot_dimension_numbers<[1], [0], [0], [1], [0, 0, 1, 1], [], []>} : vector<8x128xbf16>, vector<128x128xbf16>, vector<8x128xf32> -> vector<8x128xf32>
    %27 = vector.broadcast %25 : vector<1x128xf32> to vector<8x128xf32>
    %28 = arith.addf %26, %27 : vector<8x128xf32>
    %cst_19 = arith.constant 0.000000e+00 : f32
    %29 = vector.broadcast %cst_19 : f32 to vector<8x128xf32>
    %30 = arith.cmpf ogt, %28, %29 : vector<8x128xf32>
    %cst_20 = arith.constant 0.00999999977 : f32
    %31 = vector.broadcast %cst_20 : f32 to vector<8x128xf32>
    %32 = arith.mulf %28, %31 : vector<8x128xf32>
    %33 = arith.select %30, %28, %32 : vector<8x128xi1>, vector<8x128xf32>
    %34 = arith.truncf %33 : vector<8x128xf32> to vector<8x128xbf16>
    %c0_21 = arith.constant 0 : index
    %c0_22 = arith.constant 0 : index
    %35 = vector.load %arg8[%c0_21, %c0_22] : memref<128x4xbf16, #tpu.memory_space<vmem>>, vector<128x4xbf16>
    %c0_23 = arith.constant 0 : index
    %c0_24 = arith.constant 0 : index
    %36 = vector.load %arg9[%c0_23, %c0_24] : memref<1x4xf32, #tpu.memory_space<vmem>>, vector<1x4xf32>
    %cst_25 = arith.constant dense<0.000000e+00> : vector<8x4xf32>
    %37 = tpu.matmul %34, %35, %cst_25 {dimension_numbers = #tpu.dot_dimension_numbers<[1], [0], [0], [1], [0, 0, 1, 1], [], []>} : vector<8x128xbf16>, vector<128x4xbf16>, vector<8x4xf32> -> vector<8x4xf32>
    %38 = vector.broadcast %36 : vector<1x4xf32> to vector<8x4xf32>
    %39 = arith.addf %37, %38 : vector<8x4xf32>
    %c0_26 = arith.constant 0 : index
    %c0_27 = arith.constant 0 : index
    %40 = vector.load %arg10[%c0_26, %c0_27] : memref<8x4xf32, #tpu.memory_space<vmem>>, vector<8x4xf32>
    tpu.vector_store %arg10[%c0_26, %c0_27], %39 {strides = array<i32>} : memref<8x4xf32, #tpu.memory_space<vmem>>, vector<8x4xf32>,
    return
  }
  func.func @transform_0(%arg0: i32) -> (i32, i32) {
    %c0_i32 = arith.constant 0 : i32
    %c0_i32_0 = arith.constant 0 : i32
    return %arg0, %c0_i32 : i32, i32
  }
  func.func @transform_1(%arg0: i32) -> (i32, i32) {
    %c0_i32 = arith.constant 0 : i32
    %c0_i32_0 = arith.constant 0 : i32
    %c0_i32_1 = arith.constant 0 : i32
    return %c0_i32, %c0_i32_0 : i32, i32
  }
  func.func @transform_2(%arg0: i32) -> (i32, i32) {
    %c0_i32 = arith.constant 0 : i32
    %c0_i32_0 = arith.constant 0 : i32
    %c0_i32_1 = arith.constant 0 : i32
    return %c0_i32, %c0_i32_0 : i32, i32
  }
  func.func @transform_3(%arg0: i32) -> (i32, i32) {
    %c0_i32 = arith.constant 0 : i32
    %c0_i32_0 = arith.constant 0 : i32
    %c0_i32_1 = arith.constant 0 : i32
    return %c0_i32, %c0_i32_0 : i32, i32
  }
  func.func @transform_4(%arg0: i32) -> (i32, i32) {
    %c0_i32 = arith.constant 0 : i32
    %c0_i32_0 = arith.constant 0 : i32
    %c0_i32_1 = arith.constant 0 : i32
    return %c0_i32, %c0_i32_0 : i32, i32
  }
  func.func @transform_5(%arg0: i32) -> (i32, i32) {
    %c0_i32 = arith.constant 0 : i32
    %c0_i32_0 = arith.constant 0 : i32
    %c0_i32_1 = arith.constant 0 : i32
    return %c0_i32, %c0_i32_0 : i32, i32
  }
  func.func @transform_6(%arg0: i32) -> (i32, i32) {
    %c0_i32 = arith.constant 0 : i32
    %c0_i32_0 = arith.constant 0 : i32
    %c0_i32_1 = arith.constant 0 : i32
    return %c0_i32, %c0_i32_0 : i32, i32
  }
  func.func @transform_7(%arg0: i32) -> (i32, i32) {
    %c0_i32 = arith.constant 0 : i32
    %c0_i32_0 = arith.constant 0 : i32
    %c0_i32_1 = arith.constant 0 : i32
    return %c0_i32, %c0_i32_0 : i32, i32
  }
  func.func @transform_8(%arg0: i32) -> (i32, i32) {
    %c0_i32 = arith.constant 0 : i32
    %c0_i32_0 = arith.constant 0 : i32
    %c0_i32_1 = arith.constant 0 : i32
    return %c0_i32, %c0_i32_0 : i32, i32
  }
  func.func @transform_9(%arg0: i32) -> (i32, i32) {
    %c0_i32 = arith.constant 0 : i32
    %c0_i32_0 = arith.constant 0 : i32
    return %arg0, %c0_i32 : i32, i32
  }
}

</mosaic_0001>

<bundles_post_ra>
// kernel: tpu_custom_call.1
= control target key start
LH: loop header
LB: loop body
LE: loop exit
PB: predicated region body
PF: predicated region fallthrough
CT: control target
= control target key end

     0   :  { %14 = vsyncpa [#allocation3], 0  ;;  %s710_s0 = inlined_call_operand.hbm [shape: f32[8,16], index: 0, kind: input, shape index: {}]   ;;  %s711_s1 = inlined_call_operand.hbm [shape: bf16[16,128], index: 1, kind: input, shape index: {}]   ;;  %s712_s2 = inlined_call_operand.vmem [shape: f32[1,128], index: 2, kind: input, shape index: {}]   ;;  %s713_s3 = inlined_call_operand.vmem [shape: bf16[128,128], index: 3, kind: input, shape index: {}]   ;;  %s714_s4 = inlined_call_operand.vmem [shape: f32[1,128], index: 4, kind: input, shape index: {}]   ;;  %s715_s5 = inlined_call_operand.hbm [shape: bf16[128,128], index: 5, kind: input, shape index: {}]   ;;  %s716_s6 = inlined_call_operand.vmem [shape: f32[1,128], index: 6, kind: input, shape index: {}]   ;;  %s717_s7 = inlined_call_operand.vmem [shape: bf16[128,4], index: 7, kind: input, shape index: {}]   ;;  %s718_s8 = inlined_call_operand.vmem [shape: f32[1,4], index: 8, kind: input, shape index: {}]   ;;  %s719_s9 = inlined_call_operand.vmem [shape: f32[8,4], index: 9, kind: output, shape index: {}]  }
   0x1   :  { %15 = vsyncpa [#allocation5], 0  ;;  %s31_s11 = sshll.u32 %s711_s1, 4  ;;  %s583_s12 = smov [#allocation4]   ;;  %s32_s11 = int_to_ptr.hbm [resolvable:$true] %s31_s11 }
   0x2   :  { %s33_s13 = sshll.u32 %s583_s12, 4  ;;  %s21_s16 = sshll.u32 %s710_s0, 4  ;;  %s34_s13 = int_to_ptr.vmem [resolvable:$true] %s33_s13  ;;  %s22_s16 = int_to_ptr.hbm [resolvable:$true] %s21_s16 }
   0x3   :  { %s584_s17 = smov 64   ;;  %s585_s18 = smov 4  }
   0x4   :  { %39 = dma.hbm_to_vmem [thread:$0]  %s32_s11, 128, %s34_s13, [#allocation5], %s584_s17, %s584_s17, %s585_s18  }
   0x5   :  { %s586_s19 = smov [#allocation2]   ;;  %s50_s23 = sshll.u32 %s715_s5, 4  ;;  %s51_s23 = int_to_ptr.hbm [resolvable:$true] %s50_s23 }
   0x6   :  { %s23_s20 = sshll.u32 %s586_s19, 4  ;;  %s587_s1 = smov [#allocation6]   ;;  %s24_s20 = int_to_ptr.vmem [resolvable:$true] %s23_s20 }
   0x7   :  { %26 = dma.hbm_to_vmem [thread:$0]  %s22_s16, 128, %s24_s20, [#allocation3]  }
   0x8   :  { %s52_s24 = sshll.u32 %s587_s1, 4  ;;  %s53_s24 = int_to_ptr.vmem [resolvable:$true] %s52_s24 }
   0x9   :  { %58 = dma.hbm_to_vmem [thread:$0]  %s51_s23, 1024, %s53_s24, [#allocation5], %s584_s17, %s584_s17, %s585_s18  }
   0xa   :  { %579 = dma.done.wait [#allocation3], 128  }
   0xb   :  { %580 = vsyncadd [#allocation3], 4294967168 }
   0xc   :  { %581 = dma.done.wait [#allocation5], 1152  }
   0xd   :  { %582 = vsyncadd [#allocation5], 4294966144  ;;  %v473_v0 = vld [vmem:[#allocation4] sm:$0xff]  ;;  %v78_v1 = vld [vmem:[#allocation2] sm:$0xff]  ;;  %vm92_vm0 = vcmask 130048   ;;  %vm364_vm4 = vcmask 31744  }
   0xe   :  { %v481_v2 = vld [vmem:[%s713_s3 + $0x38] sm:$0xff]  ;;  %v79_v3 = vpack.c.bf16 %v78_v1, %v78_v1  ;;  %103 = vmatpush.bf16.msra.mxu0 %v473_v0  ;;  %v480_v4 = vld [vmem:[%s713_s3 + $0x30] sm:$0xff]  ;;  %v479_v5 = vld [vmem:[%s713_s3 + $0x28] sm:$0xff] }
   0xf   :  { %181 = vmatpush.bf16.msra.mxu1 %v481_v2  ;;  %v478_v6 = vld [vmem:[%s713_s3 + $0x20] sm:$0xff]  ;;  %v477_v7 = vld [vmem:[%s713_s3 + $0x18] sm:$0xff]  ;;  %v476_v8 = vld [vmem:[%s713_s3 + $0x10] sm:$0xff] }
  0x10   :  { %v475_v9 = vld [vmem:[%s713_s3 + $0x8] sm:$0xff]  ;;  %v474_v10 = vld [vmem:[%s713_s3] sm:$0xff]  ;;  %v487_v13 = vld [vmem:[#allocation6 + $0x28] sm:$0xff] }
  0x11   :  { %376 = vmatmul.msk.bf16.vlgmr.msra.gmra.mxu0 %vm92_vm0, %v79_v3  ;;  %v489_v11 = vld [vmem:[#allocation6 + $0x38] sm:$0xff]  ;;  %v488_v12 = vld [vmem:[#allocation6 + $0x30] sm:$0xff]  ;;  %v486_v14 = vld [vmem:[#allocation6 + $0x20] sm:$0xff] }
  0x12   :  { %266 = vmatpush.bf16.msra.mxu2 %v489_v11  ;;  %v485_v15 = vld [vmem:[#allocation6 + $0x18] sm:$0xff]  ;;  %v484_v16 = vld [vmem:[#allocation6 + $0x10] sm:$0xff]  ;;  %v483_v24 = vld [vmem:[#allocation6 + $0x8] sm:$0xff] }
  0x13   :  { %182 = vmatpush.bf16.msra.mxu1 %v480_v4  ;;  %v503_v17 = vld [vmem:[%s712_s2] ss:$0 sm:$0xff]  ;;  %v482_v25 = vld [vmem:[#allocation6] sm:$0xff]  ;;  %v497_v26 = vld [vmem:[%s717_s7 + $0x38] sm:$0xff] }
  0x14   :  { %351 = vmatpush.bf16.msra.mxu3 %v497_v26  ;;  %v496_v27 = vld [vmem:[%s717_s7 + $0x30] sm:$0xff]  ;;  %v495_v28 = vld [vmem:[%s717_s7 + $0x28] sm:$0xff]  ;;  %v494_v29 = vld [vmem:[%s717_s7 + $0x20] sm:$0xff] }
  0x15   :  { %v493_v30 = vld [vmem:[%s717_s7 + $0x18] sm:$0xff]  ;;  %v492_v31 = vld [vmem:[%s717_s7 + $0x10] sm:$0xff]  ;;  %v504_v32 = vld [vmem:[%s714_s4] ss:$0 sm:$0xff] }
  0x16   :  { %267 = vmatpush.bf16.msra.mxu2 %v488_v12  ;;  %v491_v39 = vld [vmem:[%s717_s7 + $0x8] sm:$0xff]  ;;  %v490_v40 = vld [vmem:[%s717_s7] sm:$0xff] }
  0x17   :  { %183 = vmatpush.bf16.msra.mxu1 %v479_v5  ;;  %v505_v41 = vld [vmem:[%s716_s6] ss:$0 sm:$0xff] }
  0x18   :  { %352 = vmatpush.bf16.msra.mxu3 %v496_v27  ;;  %v506_v48 = vld [vmem:[%s718_s8] ss:$0 sm:$0xff] }
  0x1a   :  { %268 = vmatpush.bf16.msra.mxu2 %v487_v13 }
  0x1b   :  { %184 = vmatpush.bf16.msra.mxu1 %v478_v6 }
  0x1c   :  { %353 = vmatpush.bf16.msra.mxu3 %v495_v28 }
  0x1e   :  { %269 = vmatpush.bf16.msra.mxu2 %v486_v14 }
  0x1f   :  { %185 = vmatpush.bf16.msra.mxu1 %v477_v7 }
  0x20   :  { %354 = vmatpush.bf16.msra.mxu3 %v494_v29 }
  0x22   :  { %270 = vmatpush.bf16.msra.mxu2 %v485_v15 }
  0x23   :  { %186 = vmatpush.bf16.msra.mxu1 %v476_v8 }
  0x24   :  { %355 = vmatpush.bf16.msra.mxu3 %v493_v30 }
  0x26   :  { %271 = vmatpush.bf16.msra.mxu2 %v484_v16 }
  0x27   :  { %187 = vmatpush.bf16.msra.mxu1 %v475_v9 }
  0x28   :  { %356 = vmatpush.bf16.msra.mxu3 %v492_v31 }
  0x2a   :  { %272 = vmatpush.bf16.msra.mxu2 %v483_v24 }
  0x2b   :  { %188 = vmatpush.bf16.msra.mxu1 %v474_v10 }
  0x2c   :  { %357 = vmatpush.bf16.msra.mxu3 %v491_v39 }
  0x2e   :  { %273 = vmatpush.bf16.msra.mxu2 %v482_v25 }
  0x30   :  { %358 = vmatpush.bf16.msra.mxu3 %v490_v40 }
  0x8e   :  { %v105_v18 = vpop.f32.mrf.mxu0 }
  0x8f   :  { %v106_v19 = vadd.f32 %v503_v17, %v105_v18 }
  0x91   :  { %v110_v20 = vmul.f32 0.01, %v106_v19  ;;  %vm109_vm1 = vcmp.gt.f32.partialorder %v106_v19, 0.0 }
  0x93   :  { %v111_v21 = vsel %vm109_vm1, %v106_v19, %v110_v20 }
  0x94   :  { %v112_v22 = vpack.c.bf16 %v111_v21, %v111_v21 }
  0x96   :  { %v107_v23 = vpop.f32.mrf.mxu0  ;;  %189 = vmatmul.bf16.vlgmr.msra.gmra.mxu1 %v112_v22 }
 0x113   :  { %v190_v33 = vpop.f32.mrf.mxu1 }
 0x114   :  { %v191_v34 = vadd.f32 %v504_v32, %v190_v33 }
 0x116   :  { %v195_v35 = vmul.f32 0.01, %v191_v34  ;;  %vm194_vm2 = vcmp.gt.f32.partialorder %v191_v34, 0.0 }
 0x118   :  { %v196_v36 = vsel %vm194_vm2, %v191_v34, %v195_v35 }
 0x119   :  { %v197_v37 = vpack.c.bf16 %v196_v36, %v196_v36 }
 0x11b   :  { %v192_v38 = vpop.f32.mrf.mxu1  ;;  %274 = vmatmul.bf16.vlgmr.msra.gmra.mxu2 %v197_v37 }
 0x19e   :  { %v275_v42 = vpop.f32.mrf.mxu2 }
 0x19f   :  { %v276_v43 = vadd.f32 %v505_v41, %v275_v42 }
 0x1a1   :  { %v280_v44 = vmul.f32 0.01, %v276_v43  ;;  %vm279_vm3 = vcmp.gt.f32.partialorder %v276_v43, 0.0 }
 0x1a3   :  { %v281_v45 = vsel %vm279_vm3, %v276_v43, %v280_v44 }
 0x1a4   :  { %v282_v46 = vpack.c.bf16 %v281_v45, %v281_v45 }
 0x1a6   :  { %v277_v47 = vpop.f32.mrf.mxu2  ;;  %359 = vmatmul.bf16.vlgmr.msra.gmra.mxu3 %v282_v46 }
 0x229   :  { %v360_v49 = vpop.f32.mrf.mxu3 }
 0x22a   :  { %v361_v50 = vadd.f32 %v506_v48, %v360_v49 }
 0x22c   :  { %365 = vst.msk [vmem:[%s719_s9] sm:$0xff] %vm364_vm4, %v361_v50 }
 0x231   :  { %v362_v51 = vpop.f32.mrf.mxu3 }
 0x232   :  { %370 = vsyncpa [#allocation3], 1 }
 0x233   :  { %371 = vsyncpa [#allocation5], 1 }

// kernel: tpu_custom_call.1
= control target key start
LH: loop header
LB: loop body
LE: loop exit
PB: predicated region body
PF: predicated region fallthrough
CT: control target
= control target key end

     0   :  { %14 = vsyncpa [#allocation3], 0  ;;  %s710_s0 = inlined_call_operand.hbm [shape: f32[8,16], index: 0, kind: input, shape index: {}]   ;;  %s711_s1 = inlined_call_operand.hbm [shape: bf16[16,128], index: 1, kind: input, shape index: {}]   ;;  %s712_s2 = inlined_call_operand.vmem [shape: f32[1,128], index: 2, kind: input, shape index: {}]   ;;  %s713_s3 = inlined_call_operand.vmem [shape: bf16[128,128], index: 3, kind: input, shape index: {}]   ;;  %s714_s4 = inlined_call_operand.vmem [shape: f32[1,128], index: 4, kind: input, shape index: {}]   ;;  %s715_s5 = inlined_call_operand.hbm [shape: bf16[128,128], index: 5, kind: input, shape index: {}]   ;;  %s716_s6 = inlined_call_operand.vmem [shape: f32[1,128], index: 6, kind: input, shape index: {}]   ;;  %s717_s7 = inlined_call_operand.vmem [shape: bf16[128,4], index: 7, kind: input, shape index: {}]   ;;  %s718_s8 = inlined_call_operand.vmem [shape: f32[1,4], index: 8, kind: input, shape index: {}]   ;;  %s719_s9 = inlined_call_operand.vmem [shape: f32[8,4], index: 9, kind: output, shape index: {}]  }
   0x1   :  { %15 = vsyncpa [#allocation5], 0  ;;  %s31_s11 = sshll.u32 %s711_s1, 4  ;;  %s583_s12 = smov [#allocation4]   ;;  %s32_s11 = int_to_ptr.hbm [resolvable:$true] %s31_s11 }
   0x2   :  { %s33_s13 = sshll.u32 %s583_s12, 4  ;;  %s21_s16 = sshll.u32 %s710_s0, 4  ;;  %s34_s13 = int_to_ptr.vmem [resolvable:$true] %s33_s13  ;;  %s22_s16 = int_to_ptr.hbm [resolvable:$true] %s21_s16 }
   0x3   :  { %s584_s17 = smov 64   ;;  %s585_s18 = smov 4  }
   0x4   :  { %39 = dma.hbm_to_vmem [thread:$0]  %s32_s11, 128, %s34_s13, [#allocation5], %s584_s17, %s584_s17, %s585_s18  }
   0x5   :  { %s586_s19 = smov [#allocation2]   ;;  %s50_s23 = sshll.u32 %s715_s5, 4  ;;  %s51_s23 = int_to_ptr.hbm [resolvable:$true] %s50_s23 }
   0x6   :  { %s23_s20 = sshll.u32 %s586_s19, 4  ;;  %s587_s1 = smov [#allocation6]   ;;  %s24_s20 = int_to_ptr.vmem [resolvable:$true] %s23_s20 }
   0x7   :  { %26 = dma.hbm_to_vmem [thread:$0]  %s22_s16, 128, %s24_s20, [#allocation3]  }
   0x8   :  { %s52_s24 = sshll.u32 %s587_s1, 4  ;;  %s53_s24 = int_to_ptr.vmem [resolvable:$true] %s52_s24 }
   0x9   :  { %58 = dma.hbm_to_vmem [thread:$0]  %s51_s23, 1024, %s53_s24, [#allocation5], %s584_s17, %s584_s17, %s585_s18  }
   0xa   :  { %579 = dma.done.wait [#allocation3], 128  }
   0xb   :  { %580 = vsyncadd [#allocation3], 4294967168 }
   0xc   :  { %581 = dma.done.wait [#allocation5], 1152  }
   0xd   :  { %582 = vsyncadd [#allocation5], 4294966144  ;;  %v473_v0 = vld [vmem:[#allocation4] sm:$0xff]  ;;  %v78_v1 = vld [vmem:[#allocation2] sm:$0xff]  ;;  %vm92_vm0 = vcmask 130048   ;;  %vm364_vm4 = vcmask 31744  }
   0xe   :  { %v481_v2 = vld [vmem:[%s713_s3 + $0x38] sm:$0xff]  ;;  %v79_v3 = vpack.c.bf16 %v78_v1, %v78_v1  ;;  %103 = vmatpush.bf16.msra.mxu0 %v473_v0  ;;  %v480_v4 = vld [vmem:[%s713_s3 + $0x30] sm:$0xff]  ;;  %v479_v5 = vld [vmem:[%s713_s3 + $0x28] sm:$0xff] }
   0xf   :  { %181 = vmatpush.bf16.msra.mxu1 %v481_v2  ;;  %v478_v6 = vld [vmem:[%s713_s3 + $0x20] sm:$0xff]  ;;  %v477_v7 = vld [vmem:[%s713_s3 + $0x18] sm:$0xff]  ;;  %v476_v8 = vld [vmem:[%s713_s3 + $0x10] sm:$0xff] }
  0x10   :  { %v475_v9 = vld [vmem:[%s713_s3 + $0x8] sm:$0xff]  ;;  %v474_v10 = vld [vmem:[%s713_s3] sm:$0xff]  ;;  %v487_v13 = vld [vmem:[#allocation6 + $0x28] sm:$0xff] }
  0x11   :  { %376 = vmatmul.msk.bf16.vlgmr.msra.gmra.mxu0 %vm92_vm0, %v79_v3  ;;  %v489_v11 = vld [vmem:[#allocation6 + $0x38] sm:$0xff]  ;;  %v488_v12 = vld [vmem:[#allocation6 + $0x30] sm:$0xff]  ;;  %v486_v14 = vld [vmem:[#allocation6 + $0x20] sm:$0xff] }
  0x12   :  { %266 = vmatpush.bf16.msra.mxu2 %v489_v11  ;;  %v485_v15 = vld [vmem:[#allocation6 + $0x18] sm:$0xff]  ;;  %v484_v16 = vld [vmem:[#allocation6 + $0x10] sm:$0xff]  ;;  %v483_v24 = vld [vmem:[#allocation6 + $0x8] sm:$0xff] }
  0x13   :  { %182 = vmatpush.bf16.msra.mxu1 %v480_v4  ;;  %v503_v17 = vld [vmem:[%s712_s2] ss:$0 sm:$0xff]  ;;  %v482_v25 = vld [vmem:[#allocation6] sm:$0xff]  ;;  %v497_v26 = vld [vmem:[%s717_s7 + $0x38] sm:$0xff] }
  0x14   :  { %351 = vmatpush.bf16.msra.mxu3 %v497_v26  ;;  %v496_v27 = vld [vmem:[%s717_s7 + $0x30] sm:$0xff]  ;;  %v495_v28 = vld [vmem:[%s717_s7 + $0x28] sm:$0xff]  ;;  %v494_v29 = vld [vmem:[%s717_s7 + $0x20] sm:$0xff] }
  0x15   :  { %v493_v30 = vld [vmem:[%s717_s7 + $0x18] sm:$0xff]  ;;  %v492_v31 = vld [vmem:[%s717_s7 + $0x10] sm:$0xff]  ;;  %v504_v32 = vld [vmem:[%s714_s4] ss:$0 sm:$0xff] }
  0x16   :  { %267 = vmatpush.bf16.msra.mxu2 %v488_v12  ;;  %v491_v39 = vld [vmem:[%s717_s7 + $0x8] sm:$0xff]  ;;  %v490_v40 = vld [vmem:[%s717_s7] sm:$0xff] }
  0x17   :  { %183 = vmatpush.bf16.msra.mxu1 %v479_v5  ;;  %v505_v41 = vld [vmem:[%s716_s6] ss:$0 sm:$0xff] }
  0x18   :  { %352 = vmatpush.bf16.msra.mxu3 %v496_v27  ;;  %v506_v48 = vld [vmem:[%s718_s8] ss:$0 sm:$0xff] }
  0x1a   :  { %268 = vmatpush.bf16.msra.mxu2 %v487_v13 }
  0x1b   :  { %184 = vmatpush.bf16.msra.mxu1 %v478_v6 }
  0x1c   :  { %353 = vmatpush.bf16.msra.mxu3 %v495_v28 }
  0x1e   :  { %269 = vmatpush.bf16.msra.mxu2 %v486_v14 }
  0x1f   :  { %185 = vmatpush.bf16.msra.mxu1 %v477_v7 }
  0x20   :  { %354 = vmatpush.bf16.msra.mxu3 %v494_v29 }
  0x22   :  { %270 = vmatpush.bf16.msra.mxu2 %v485_v15 }
  0x23   :  { %186 = vmatpush.bf16.msra.mxu1 %v476_v8 }
  0x24   :  { %355 = vmatpush.bf16.msra.mxu3 %v493_v30 }
  0x26   :  { %271 = vmatpush.bf16.msra.mxu2 %v484_v16 }
  0x27   :  { %187 = vmatpush.bf16.msra.mxu1 %v475_v9 }
  0x28   :  { %356 = vmatpush.bf16.msra.mxu3 %v492_v31 }
  0x2a   :  { %272 = vmatpush.bf16.msra.mxu2 %v483_v24 }
  0x2b   :  { %188 = vmatpush.bf16.msra.mxu1 %v474_v10 }
  0x2c   :  { %357 = vmatpush.bf16.msra.mxu3 %v491_v39 }
  0x2e   :  { %273 = vmatpush.bf16.msra.mxu2 %v482_v25 }
  0x30   :  { %358 = vmatpush.bf16.msra.mxu3 %v490_v40 }
  0x8e   :  { %v105_v18 = vpop.f32.mrf.mxu0 }
  0x8f   :  { %v106_v19 = vadd.f32 %v503_v17, %v105_v18 }
  0x91   :  { %v110_v20 = vmul.f32 0.01, %v106_v19  ;;  %vm109_vm1 = vcmp.gt.f32.partialorder %v106_v19, 0.0 }
  0x93   :  { %v111_v21 = vsel %vm109_vm1, %v106_v19, %v110_v20 }
  0x94   :  { %v112_v22 = vpack.c.bf16 %v111_v21, %v111_v21 }
  0x96   :  { %v107_v23 = vpop.f32.mrf.mxu0  ;;  %189 = vmatmul.bf16.vlgmr.msra.gmra.mxu1 %v112_v22 }
 0x113   :  { %v190_v33 = vpop.f32.mrf.mxu1 }
 0x114   :  { %v191_v34 = vadd.f32 %v504_v32, %v190_v33 }
 0x116   :  { %v195_v35 = vmul.f32 0.01, %v191_v34  ;;  %vm194_vm2 = vcmp.gt.f32.partialorder %v191_v34, 0.0 }
 0x118   :  { %v196_v36 = vsel %vm194_vm2, %v191_v34, %v195_v35 }
 0x119   :  { %v197_v37 = vpack.c.bf16 %v196_v36, %v196_v36 }
 0x11b   :  { %v192_v38 = vpop.f32.mrf.mxu1  ;;  %274 = vmatmul.bf16.vlgmr.msra.gmra.mxu2 %v197_v37 }
 0x19e   :  { %v275_v42 = vpop.f32.mrf.mxu2 }
 0x19f   :  { %v276_v43 = vadd.f32 %v505_v41, %v275_v42 }
 0x1a1   :  { %v280_v44 = vmul.f32 0.01, %v276_v43  ;;  %vm279_vm3 = vcmp.gt.f32.partialorder %v276_v43, 0.0 }
 0x1a3   :  { %v281_v45 = vsel %vm279_vm3, %v276_v43, %v280_v44 }
 0x1a4   :  { %v282_v46 = vpack.c.bf16 %v281_v45, %v281_v45 }
 0x1a6   :  { %v277_v47 = vpop.f32.mrf.mxu2  ;;  %359 = vmatmul.bf16.vlgmr.msra.gmra.mxu3 %v282_v46 }
 0x229   :  { %v360_v49 = vpop.f32.mrf.mxu3 }
 0x22a   :  { %v361_v50 = vadd.f32 %v506_v48, %v360_v49 }
 0x22c   :  { %365 = vst.msk [vmem:[%s719_s9] sm:$0xff] %vm364_vm4, %v361_v50 }
 0x231   :  { %v362_v51 = vpop.f32.mrf.mxu3 }
 0x232   :  { %370 = vsyncpa [#allocation3], 1 }
 0x233   :  { %371 = vsyncpa [#allocation5], 1 }

</bundles_post_ra>
